<compile_context>
chip_gen: v5e
topology: v5e:2x2
jax: 0.10.0
libtpu: 0.0.40
codegen_flags: <defaults>
</compile_context>

<pallas_src>
import inspect

import jax
import jax.numpy as jnp
from jax.experimental import pallas as pl
from jax.experimental.pallas import tpu as pltpu


def attn_gate_kernel(g_ref, x_ref, wg_ref, wx_ref, b_ref, wpsi_ref, bpsi_ref,
                     o_ref):
    # g_ref: (1, F_g, TP), x_ref: (1, F_l, TP); weights resident across grid.
    g = g_ref[0]                                           # native dtype
    x = x_ref[0]                                           # native dtype

    # Fused 1x1 convs (BN scale pre-folded), f32 accumulation on the MXU.
    acc = jnp.dot(wg_ref[...], g, preferred_element_type=jnp.float32)
    acc = acc + jnp.dot(wx_ref[...], x, preferred_element_type=jnp.float32)
    h = jnp.maximum(acc + b_ref[...], 0.0)                 # (F_int, TP) f32

    # Psi (F_int -> 1): VPU multiply + sublane reduce; b_psi scalar from SMEM.
    psi_logit = jnp.sum(h * wpsi_ref[...], axis=0, keepdims=True) + bpsi_ref[0, 0]
    psi = jax.nn.sigmoid(psi_logit)                        # (1, TP) f32

    # Gate x by psi (broadcast over channels); lane-dense store, native dtype.
    o_ref[0] = (x * psi.astype(x.dtype)).astype(o_ref.dtype)


def _tpu_vmem_capacity_bytes(default=64 << 20):
    try:
        return int(pltpu.get_tpu_info().vmem_capacity_bytes)
    except Exception:
        return default


def _supports_buffered():
    try:
        return (hasattr(pl, "Buffered")
                and "pipeline_mode" in inspect.signature(pl.BlockSpec).parameters)
    except Exception:
        return False


def unet_attention_block(g, x, folded, *, max_tile_p=2048):
    """g: (N, F_g, H, W), x: (N, F_l, H, W) -> (N, F_l, H, W). Eval-mode BN."""
    N, F_g, H, W = g.shape
    _, F_l, _, _ = x.shape
    F_int = folded["wg_fold"].shape[0]
    hw = H * W

    # Free reshapes: pixels on the lane axis, channels on sublanes.
    g3 = g.reshape(N, F_g, hw)
    x3 = x.reshape(N, F_l, hw)

    # Feed the MXU in the streamed dtype (bf16 models stay bf16 end-to-end);
    # psi math / accumulation remain f32.
    compute_dtype = x.dtype
    wg_w = folded["wg_fold"].astype(compute_dtype)          # (F_int, F_g)
    wx_w = folded["wx_fold"].astype(compute_dtype)          # (F_int, F_l)
    b_gx = folded["bias_gx"]                                # (F_int, 1) f32
    wpsi = folded["wpsi_fold"]                              # (F_int, 1) f32
    b_psi = folded["bias_psi"]                              # (1, 1)   f32 (SMEM)

    itemsize = jnp.dtype(compute_dtype).itemsize
    weight_bytes = F_int * (F_g + F_l) * itemsize + (2 * F_int + 1) * 4

    # Per-generation VMEM budget for the per-step working set.
    vmem_cap = _tpu_vmem_capacity_bytes()
    budget = max(16 << 20, vmem_cap // 3)

    def working_set(tp, nbuf):
        stream = nbuf * (F_g + 2 * F_l) * tp * itemsize     # g + x + out buffers
        temps = (F_int + 2) * tp * 4                        # h, psi (f32)
        return stream + temps + weight_bytes

    if hw < 128:
        tile_p = hw                    # block == full dim (no 128-alignment needed)
    else:
        tile_p = min(max_tile_p, pl.cdiv(hw, 128) * 128)
        while tile_p > 128 and working_set(tile_p, 2) > budget:
            tile_p -= 128
        # v7x: 2 TCs sharded over the parallel grid -> ensure >= 2 grid steps.
        while N * pl.cdiv(hw, tile_p) < 2 and tile_p > 128:
            tile_p = max(128, ((tile_p // 2) // 128) * 128)

    n_tiles = pl.cdiv(hw, tile_p)
    grid = (N, n_tiles)

    # Deeper pipelining on 128-MiB parts (v5e/v6e) when it fits and the API
    # supports it; v7x (64 MiB) keeps the default double-buffering.
    use_buf3 = (_supports_buffered() and vmem_cap >= (100 << 20)
                and working_set(tile_p, 3) <= budget)
    nbuf = 3 if use_buf3 else 2

    def stream_spec(c, imap):
        if use_buf3:
            return pl.BlockSpec((1, c, tile_p), imap, pipeline_mode=pl.Buffered(3))
        return pl.BlockSpec((1, c, tile_p), imap)

    cost = pl.CostEstimate(
        flops=2 * N * hw * F_int * (F_g + F_l + 1),
        transcendentals=N * hw,
        bytes_accessed=itemsize * N * hw * (F_g + 2 * F_l) + weight_bytes,
    )

    # working_set already counts the multi-buffering factor -- no extra 2x.
    vmem_limit = int(min(max(working_set(tile_p, nbuf) + (4 << 20), 16 << 20),
                         48 << 20))

    out3 = pl.pallas_call(
        attn_gate_kernel,
        out_shape=jax.ShapeDtypeStruct((N, F_l, hw), x.dtype),
        grid_spec=pltpu.PrefetchScalarGridSpec(
            num_scalar_prefetch=0,
            grid=grid,
            in_specs=[
                stream_spec(F_g, lambda n, p: (n, 0, p)),                 # g
                stream_spec(F_l, lambda n, p: (n, 0, p)),                 # x
                pl.BlockSpec((F_int, F_g), lambda n, p: (0, 0)),          # Wg'
                pl.BlockSpec((F_int, F_l), lambda n, p: (0, 0)),          # Wx'
                pl.BlockSpec((F_int, 1), lambda n, p: (0, 0)),            # bias
                pl.BlockSpec((F_int, 1), lambda n, p: (0, 0)),            # wpsi'
                pl.BlockSpec(memory_space=pltpu.MemorySpace.SMEM),        # b_psi
            ],
            out_specs=stream_spec(F_l, lambda n, p: (n, 0, p)),
        ),
        compiler_params=pltpu.CompilerParams(
            dimension_semantics=("parallel", "parallel"),
            vmem_limit_bytes=vmem_limit),
        cost_estimate=cost,
    )(g3, x3, wg_w, wx_w, b_gx, wpsi, b_psi)

    return out3.reshape(N, F_l, H, W)


def make_params(key, F_g, F_l, F_int):
    """Deterministic PyTorch-style params: conv weights (out,in) + BN stats."""
    ks = jax.random.split(key, 15)
    return {
        "wg": 0.1 * jax.random.normal(ks[0], (F_int, F_g), jnp.float32),
        "wx": 0.1 * jax.random.normal(ks[1], (F_int, F_l), jnp.float32),
        "wpsi": 0.1 * jax.random.normal(ks[2], (1, F_int), jnp.float32),
        "g_gamma": 1.0 + 0.05 * jax.random.normal(ks[3], (F_int,), jnp.float32),
        "g_beta": 0.05 * jax.random.normal(ks[4], (F_int,), jnp.float32),
        "g_mean": 0.01 * jax.random.normal(ks[5], (F_int,), jnp.float32),
        "g_var": 1.0 + 0.1 * jax.random.uniform(ks[6], (F_int,), jnp.float32),
        "x_gamma": 1.0 + 0.05 * jax.random.normal(ks[7], (F_int,), jnp.float32),
        "x_beta": 0.05 * jax.random.normal(ks[8], (F_int,), jnp.float32),
        "x_mean": 0.01 * jax.random.normal(ks[9], (F_int,), jnp.float32),
        "x_var": 1.0 + 0.1 * jax.random.uniform(ks[10], (F_int,), jnp.float32),
        "p_gamma": 1.0 + 0.05 * jax.random.normal(ks[11], (1,), jnp.float32),
        "p_beta": 0.05 * jax.random.normal(ks[12], (1,), jnp.float32),
        "p_mean": 0.01 * jax.random.normal(ks[13], (1,), jnp.float32),
        "p_var": 1.0 + 0.1 * jax.random.uniform(ks[14], (1,), jnp.float32),
    }


def fold_params(p, eps=1e-5):
    """Fold eval-mode BatchNorm into the 1x1 conv weights / a single bias."""
    sg = p["g_gamma"] / jnp.sqrt(p["g_var"] + eps)
    bg = p["g_beta"] - p["g_mean"] * sg
    sx = p["x_gamma"] / jnp.sqrt(p["x_var"] + eps)
    bx = p["x_beta"] - p["x_mean"] * sx
    sp = p["p_gamma"] / jnp.sqrt(p["p_var"] + eps)
    bp = p["p_beta"] - p["p_mean"] * sp
    F_int = p["wg"].shape[0]
    return {
        "wg_fold": sg[:, None] * p["wg"],                    # (F_int, F_g)
        "wx_fold": sx[:, None] * p["wx"],                    # (F_int, F_l)
        "bias_gx": (bg + bx).reshape(F_int, 1),              # (F_int, 1)
        "wpsi_fold": (sp[0] * p["wpsi"]).reshape(F_int, 1),  # (F_int, 1)
        "bias_psi": bp.reshape(1, 1),                        # (1, 1) scalar (SMEM)
    }


def reference_forward(g, x, p, eps=1e-5):
    """Plain-JAX NCHW reference matching the PyTorch forward (eval-mode BN)."""
    def conv1x1(t, w):  # w: (C_out, C_in)
        return jnp.einsum("oi,nihw->nohw", w, t.astype(jnp.float32))

    def bn(t, gamma, beta, mean, var):
        s = gamma / jnp.sqrt(var + eps)
        b = beta - mean * s
        return t * s[None, :, None, None] + b[None, :, None, None]

    hg = bn(conv1x1(g, p["wg"]), p["g_gamma"], p["g_beta"], p["g_mean"], p["g_var"])
    hx = bn(conv1x1(x, p["wx"]), p["x_gamma"], p["x_beta"], p["x_mean"], p["x_var"])
    h = jnp.maximum(hg + hx, 0.0)
    psi = jax.nn.sigmoid(
        bn(conv1x1(h, p["wpsi"]), p["p_gamma"], p["p_beta"], p["p_mean"], p["p_var"]))
    return (x.astype(jnp.float32) * psi).astype(x.dtype)


if __name__ == "__main__":
    key = jax.random.PRNGKey(0)

    # (N, F_g, F_l, F_int, H, W): main case + ragged last pixel tile + hw < 128.
    cases = [
        (2, 4, 4, 8, 16, 16),   # hw = 256, exact tiles
        (1, 6, 4, 8, 48, 48),   # hw = 2304 -> ragged last 2048-wide pixel tile
        (1, 4, 4, 8, 8, 8),     # hw = 64 < 128 -> full-dim pixel block
    ]

    for idx, (N, F_g, F_l, F_int, H, W) in enumerate(cases):
        k_g, k_x, k_p = jax.random.split(jax.random.fold_in(key, idx), 3)
        g = jax.random.normal(k_g, (N, F_g, H, W), jnp.float32)
        x = jax.random.normal(k_x, (N, F_l, H, W), jnp.float32)

        params = make_params(k_p, F_g, F_l, F_int)
        folded = fold_params(params)

        out = jax.block_until_ready(unet_attention_block(g, x, folded))
        ref = reference_forward(g, x, params)

        assert out.shape == (N, F_l, H, W)
        err = float(jnp.max(jnp.abs(out.astype(jnp.float32)
                                    - ref.astype(jnp.float32))))
        assert err < 1e-4, f"case {idx}: max abs err {err}"

    print("KERNEL_OK")
</pallas_src>

<mosaic_0001>
module attributes {stable_mosaic.version = 11 : i64} {
  func.func @attn_gate_kernel(%arg0: i32, %arg1: i32, %arg2: memref<1x4x256xf32, #tpu.memory_space<vmem>>, %arg3: memref<1x4x256xf32, #tpu.memory_space<vmem>>, %arg4: memref<8x4xf32, #tpu.memory_space<vmem>>, %arg5: memref<8x4xf32, #tpu.memory_space<vmem>>, %arg6: memref<8x1xf32, #tpu.memory_space<vmem>>, %arg7: memref<8x1xf32, #tpu.memory_space<vmem>>, %arg8: memref<1x1xf32, #tpu.memory_space<smem>>, %arg9: memref<1x4x256xf32, #tpu.memory_space<vmem>>) attributes {dimension_semantics = [#tpu.dimension_semantics<parallel>, #tpu.dimension_semantics<parallel>], iteration_bounds = array<i64: 2, 1>, scalar_prefetch = 0 : i64, scratch_operands = 0 : i64, tpu.core_type = #tpu.core_type<tc>, window_params = [{transform_indices = @transform_0, window_bounds = array<i64: 1, 4, 256>}, {transform_indices = @transform_1, window_bounds = array<i64: 1, 4, 256>}, {pipeline_mode = #tpu.pipeline_mode<synchronous>, transform_indices = @transform_2, window_bounds = array<i64: 8, 4>}, {pipeline_mode = #tpu.pipeline_mode<synchronous>, transform_indices = @transform_3, window_bounds = array<i64: 8, 4>}, {pipeline_mode = #tpu.pipeline_mode<synchronous>, transform_indices = @transform_4, window_bounds = array<i64: 8, 1>}, {pipeline_mode = #tpu.pipeline_mode<synchronous>, transform_indices = @transform_5, window_bounds = array<i64: 8, 1>}, {transform_indices = @transform_6, window_bounds = array<i64: 1, 1>}, {transform_indices = @transform_7, window_bounds = array<i64: 1, 4, 256>}]} {
    %c0 = arith.constant 0 : index
    %c0_0 = arith.constant 0 : index
    %c0_1 = arith.constant 0 : index
    %0 = vector.load %arg2[%c0, %c0_0, %c0_1] : memref<1x4x256xf32, #tpu.memory_space<vmem>>, vector<1x4x256xf32>
    %1 = vector.shape_cast %0 : vector<1x4x256xf32> to vector<4x256xf32>
    %c0_2 = arith.constant 0 : index
    %c0_3 = arith.constant 0 : index
    %c0_4 = arith.constant 0 : index
    %2 = vector.load %arg3[%c0_2, %c0_3, %c0_4] : memref<1x4x256xf32, #tpu.memory_space<vmem>>, vector<1x4x256xf32>
    %3 = vector.shape_cast %2 : vector<1x4x256xf32> to vector<4x256xf32>
    %c0_5 = arith.constant 0 : index
    %c0_6 = arith.constant 0 : index
    %4 = vector.load %arg4[%c0_5, %c0_6] : memref<8x4xf32, #tpu.memory_space<vmem>>, vector<8x4xf32>
    %cst = arith.constant dense<0.000000e+00> : vector<8x256xf32>
    %5 = tpu.matmul %4, %1, %cst {dimension_numbers = #tpu.dot_dimension_numbers<[1], [0], [0], [1], [0, 0, 1, 1], [], []>} : vector<8x4xf32>, vector<4x256xf32>, vector<8x256xf32> -> vector<8x256xf32>
    %c0_7 = arith.constant 0 : index
    %c0_8 = arith.constant 0 : index
    %6 = vector.load %arg5[%c0_7, %c0_8] : memref<8x4xf32, #tpu.memory_space<vmem>>, vector<8x4xf32>
    %cst_9 = arith.constant dense<0.000000e+00> : vector<8x256xf32>
    %7 = tpu.matmul %6, %3, %cst_9 {dimension_numbers = #tpu.dot_dimension_numbers<[1], [0], [0], [1], [0, 0, 1, 1], [], []>} : vector<8x4xf32>, vector<4x256xf32>, vector<8x256xf32> -> vector<8x256xf32>
    %8 = arith.addf %5, %7 : vector<8x256xf32>
    %c0_10 = arith.constant 0 : index
    %c0_11 = arith.constant 0 : index
    %9 = vector.load %arg6[%c0_10, %c0_11] : memref<8x1xf32, #tpu.memory_space<vmem>>, vector<8x1xf32>
    %10 = vector.broadcast %9 : vector<8x1xf32> to vector<8x256xf32>
    %11 = arith.addf %8, %10 : vector<8x256xf32>
    %cst_12 = arith.constant 0.000000e+00 : f32
    %12 = vector.broadcast %cst_12 : f32 to vector<8x256xf32>
    %13 = arith.maximumf %11, %12 : vector<8x256xf32>
    %c0_13 = arith.constant 0 : index
    %c0_14 = arith.constant 0 : index
    %14 = vector.load %arg7[%c0_13, %c0_14] : memref<8x1xf32, #tpu.memory_space<vmem>>, vector<8x1xf32>
    %15 = vector.broadcast %14 : vector<8x1xf32> to vector<8x256xf32>
    %16 = arith.mulf %13, %15 : vector<8x256xf32>
    %cst_15 = arith.constant dense<0.000000e+00> : vector<256xf32>
    %17 = vector.multi_reduction <add>, %16, %cst_15 [0] : vector<8x256xf32> to vector<256xf32>
    %18 = vector.shape_cast %17 : vector<256xf32> to vector<1x256xf32>
    %c0_16 = arith.constant 0 : index
    %c0_17 = arith.constant 0 : index
    %19 = memref.load %arg8[%c0_16, %c0_17] : memref<1x1xf32, #tpu.memory_space<smem>>
    %20 = vector.broadcast %19 : f32 to vector<1x256xf32>
    %21 = arith.addf %18, %20 : vector<1x256xf32>
    %22 = arith.negf %21 : vector<1x256xf32>
    %23 = math.exp %22 : vector<1x256xf32>
    %cst_18 = arith.constant 1.000000e+00 : f32
    %24 = vector.broadcast %cst_18 : f32 to vector<1x256xf32>
    %25 = arith.addf %24, %23 : vector<1x256xf32>
    %26 = arith.divf %24, %25 : vector<1x256xf32>
    %27 = vector.broadcast %26 : vector<1x256xf32> to vector<4x256xf32>
    %28 = arith.mulf %3, %27 : vector<4x256xf32>
    %c0_19 = arith.constant 0 : index
    %c0_20 = arith.constant 0 : index
    %c0_21 = arith.constant 0 : index
    %29 = vector.load %arg9[%c0_19, %c0_20, %c0_21] : memref<1x4x256xf32, #tpu.memory_space<vmem>>, vector<1x4x256xf32>
    %30 = vector.shape_cast %29 : vector<1x4x256xf32> to vector<4x256xf32>
    %31 = vector.shape_cast %28 : vector<4x256xf32> to vector<1x4x256xf32>
    tpu.vector_store %arg9[%c0_19, %c0_20, %c0_21], %31 {strides = array<i32>} : memref<1x4x256xf32, #tpu.memory_space<vmem>>, vector<1x4x256xf32>,
    return
  }
  func.func @transform_0(%arg0: i32, %arg1: i32) -> (i32, i32, i32) {
    %c0_i32 = arith.constant 0 : i32
    %c0_i32_0 = arith.constant 0 : i32
    return %arg0, %c0_i32, %arg1 : i32, i32, i32
  }
  func.func @transform_1(%arg0: i32, %arg1: i32) -> (i32, i32, i32) {
    %c0_i32 = arith.constant 0 : i32
    %c0_i32_0 = arith.constant 0 : i32
    return %arg0, %c0_i32, %arg1 : i32, i32, i32
  }
  func.func @transform_2(%arg0: i32, %arg1: i32) -> (i32, i32) {
    %c0_i32 = arith.constant 0 : i32
    %c0_i32_0 = arith.constant 0 : i32
    %c0_i32_1 = arith.constant 0 : i32
    return %c0_i32, %c0_i32_0 : i32, i32
  }
  func.func @transform_3(%arg0: i32, %arg1: i32) -> (i32, i32) {
    %c0_i32 = arith.constant 0 : i32
    %c0_i32_0 = arith.constant 0 : i32
    %c0_i32_1 = arith.constant 0 : i32
    return %c0_i32, %c0_i32_0 : i32, i32
  }
  func.func @transform_4(%arg0: i32, %arg1: i32) -> (i32, i32) {
    %c0_i32 = arith.constant 0 : i32
    %c0_i32_0 = arith.constant 0 : i32
    %c0_i32_1 = arith.constant 0 : i32
    return %c0_i32, %c0_i32_0 : i32, i32
  }
  func.func @transform_5(%arg0: i32, %arg1: i32) -> (i32, i32) {
    %c0_i32 = arith.constant 0 : i32
    %c0_i32_0 = arith.constant 0 : i32
    %c0_i32_1 = arith.constant 0 : i32
    return %c0_i32, %c0_i32_0 : i32, i32
  }
  func.func @transform_6(%arg0: i32, %arg1: i32) -> (i32, i32) {
    %c0_i32 = arith.constant 0 : i32
    %c0_i32_0 = arith.constant 0 : i32
    %c0_i32_1 = arith.constant 0 : i32
    return %c0_i32, %c0_i32_0 : i32, i32
  }
  func.func @transform_7(%arg0: i32, %arg1: i32) -> (i32, i32, i32) {
    %c0_i32 = arith.constant 0 : i32
    %c0_i32_0 = arith.constant 0 : i32
    return %arg0, %c0_i32, %arg1 : i32, i32, i32
  }
}

</mosaic_0001>

<bundles_post_ra>
// kernel: tpu_custom_call.1
= control target key start
LH: loop header
LB: loop body
LE: loop exit
PB: predicated region body
PF: predicated region fallthrough
CT: control target
= control target key end

     0   :  { %s996_s0 = inlined_call_operand.vmem [shape: f32[2,4,256], index: 0, kind: input, shape index: {}]   ;;  %s997_s1 = inlined_call_operand.vmem [shape: f32[2,4,256], index: 1, kind: input, shape index: {}]   ;;  %s998_s2 = inlined_call_operand.vmem [shape: f32[8,4], index: 2, kind: input, shape index: {}]   ;;  %s999_s3 = inlined_call_operand.vmem [shape: f32[8,4], index: 3, kind: input, shape index: {}]   ;;  %s1000_s4 = inlined_call_operand.vmem [shape: f32[8,1], index: 4, kind: input, shape index: {}]   ;;  %s1001_s5 = inlined_call_operand.vmem [shape: f32[8,1], index: 5, kind: input, shape index: {}]   ;;  %s1002_s6 = inlined_call_operand.<no memory space> [shape: f32[1,1], index: 6, kind: input, shape index: {}]   ;;  %s1003_s7 = inlined_call_operand.hbm [shape: f32[2,4,256], index: 7, kind: output, shape index: {}]  }
   0x1   :  { %12 = sst [smem:[#allocation2]] %s1002_s6 }
   0x2   :  { %13 = vsyncpa [#allocation4], 0 }
   0x3   :  { %15 = vsyncpa [#allocation4 + $0x1], 0  ;;  %s862_s26 = smov 0   ;;  %s864_s27 = smov 0  }
   0x4   :  { %s866_s28 = smov 0   ;;  %s868_s29 = smov 0  }
   0x5   :  { %s870_s30 = smov 0   ;;  %s872_s8 = smov 0  }
   0x6 LB: > { %s645_s6 = sadd.s32 4294967295, %s816_s8   ;;  %s646_s9 = sadd.s32 4294967294, %s816_s8   ;;  %s816_s8 = sphi %s872_s8, %s21_s8   ;;  %s812_s30 = sphi %s870_s30, %s1012_s30   ;;  %s808_s29 = sphi %s868_s29, %s1011_s29   ;;  %s804_s28 = sphi %s866_s28, %s1010_s28   ;;  %s800_s27 = sphi %s864_s27, %s1009_s27   ;;  %s796_s26 = sphi %s862_s26, %s1008_s26  }
   0x7   : > { %s33_s10 = sadd.s32 1, %s812_s30  ;;  %s203_s11 = sadd.s32 1, %s804_s28 }
   0x8   : > { %p35_p0 = scmp.ge.s32.totalorder %s33_s10, 2  ;;  %p213_p1 = scmp.ne.s32.totalorder %s804_s28, %s800_s27 }
   0x9   : > { %p214_p2 = scmp.eq.s32.totalorder %s645_s6, 1  ;;  %p219_p3 = scmp.ne.s32.totalorder %s800_s27, %s796_s26 }
   0xa   : > { %s1014_s10 = smov (%p35_p0, %s33_s10), 0  ;;  %p220_p5 = scmp.eq.s32.totalorder %s646_s9, 1 }
   0xb   : > { %p902_p4 = por %p214_p2, %p213_p1  ;;  %s198_s13 = ssub.s32 %s812_s30, %s1014_s10 }
   0xc   : > { %p649_p6 = scmp.ge.s32.totalorder %s816_s8, 1  ;;  %p201_p7 = scmp.eq.s32.totalorder %s198_s13, 0 }
   0xd   : > { %p909_p8 = por %p220_p5, %p219_p3  ;;  %p279_p9 = scmp.lt.s32.totalorder %s816_s8, 3 }
   0xe   : > { %s915_s15 = scalar_select %p201_p7, %s804_s28, %s203_s11  }
   0xf   : > { %p280_p10 = pnand %p649_p6, %p279_p9 }
  0x10   : > { %p325_p11 = scmp.lt.s32.totalorder (!%p280_p10), %s808_s29, 1  ;;  %s672_s21 = sshll.u32 (!%p280_p10), %s808_s29, 3 }
  0x11   : > { %283 = sbr.rel (%p280_p10) target bundleno = 235 (0xeb), region = 48  ;;  %s546_s24 = scalar_lea.hbm (!%p280_p10), %s1003_s7, %s672_s21 }
  0x12   : > { %s550_s6 = sshll.u32 (!%p280_p10), %s546_s24, 4  ;;  %s551_s6 = int_to_ptr.hbm [resolvable:$true] %s550_s6 }
  0x13   : > { %s752_s11 = sshra.s32 (!%p280_p10), %s551_s6, 4  ;;  %s753_s11 = int_to_ptr.hbm [resolvable:$true] %s752_s11 }
  0x14   : > { %s754_s13 = scalar_lea.hbm (!%p280_p10), %s753_s11, 8  ;;  %p759_p1 = scmp.lt.s32.totalorder (!%p280_p10), %s753_s11, %s1003_s7 }
  0x15   : > { %p755_p12 = scmp.ne.s32.totalorder (!%p280_p10), %s753_s11, %s754_s13 }
  0x16   : > { %v818_v0 = vmov 0   ;;  %v453_v1 = vld [vmem:[%s1000_s4] sm:$0xff]  ;;  %s326_s18 = scalar_select %p325_p11, %s808_s29, 1  ;;  %vm357_vm0 = vcmask 1043456   ;;  %vm353_vm1 = vcmask 31744  }
  0x17   : > { %729 = vset.pattern.permute.xlu0 %v818_v0  ;;  %v463_v3 = vld [vmem:[%s1001_s5] sm:$0xff]  ;;  %p756_p13 = pnand %p755_p12, %p902_p4 }
  0x18   : > { %456 = vperm.xlu0 %729, %v453_v1   ;;  %s670_s19 = sshll.u32 %s326_s18, 3  ;;  %v348_v5 = vld [vmem:[%s999_s3] sm:$0xff]  ;;  %s483_s18 = sld [smem:[#allocation2]] }
  0x19   : > { %s342_s22 = scalar_lea.vmem %s997_s1, %s670_s19  ;;  %s332_s9 = scalar_lea.vmem %s996_s0, %s670_s19  ;;  %v347_v8 = vld [vmem:[%s998_s2] sm:$0xff] }
  0x1a   : > { %v925_v2 = vld [vmem:[%s342_s22] sm:$0xff]  ;;  %s321_s19 = sand.u32 1, %s800_s27   ;;  %p757_p0 = pneg %p756_p13 }
  0x1b   : > { %350 = vst [vmem:[#allocation1] ss:$2 sm:$0xff] %v925_v2  ;;  %v345_v4 = vld [vmem:[%s332_s9] sm:$0xff]  ;;  %s947_s20 = sshll.u32 %s321_s19, 3  ;;  %s533_s9 = scalar_lea.sflag [#allocation4], %s321_s19 }
  0x1c   : > { %s323_s29 = scalar_lea.vmem [#allocation3], %s947_s20 }
  0x1d   : > { %s548_s25 = sshll.u32 %s323_s29, 4  ;;  %s549_s25 = int_to_ptr.vmem [resolvable:$true] %s548_s25 }
  0x1e   : > { %v484_v35 = vstv %s483_s18  ;;  %s758_s18 = scalar_lea.hbm %s1003_s7, 16 }
  0x1f   : > { %p760_p2 = scmp.lt.s32.totalorder %s758_s18, %s754_s13 }
  0x20   : > { %466 = vperm.xlu0 %729, %v463_v3  }
  0x21   : > { %p761_p3 = por %p760_p2, %p759_p1 }
  0x22   : > { %v351_v6 = vld.sshfl [vmem:[#allocation1] sm:$0xff pattern:$0x75316420]  ;;  %v352_v7 = vld.sshfl [vmem:[#allocation1 + $0x8] sm:$0xff pattern:$0x75316420] }
  0x23   : > { %403 = vst [vmem:[#allocation1] ss:$2 sm:$0xff] %v345_v4  ;;  %655 = vmatpush.msk.msra.mxu0 %vm357_vm0, %v351_v6  ;;  %657 = vmatpush.msk.msra.mxu1 %vm357_vm0, %v352_v7  ;;  %p762_p5 = pnand %p761_p3, %p757_p0 }
  0x24   : > { %656 = vmatmul.msk.f32.vlgmr.msra.gmra.mxu0 %vm353_vm1, %v348_v5  ;;  %658 = vmatmul.msk.f32.vlgmr.msra.gmra.mxu1 %vm353_vm1, %v348_v5 }
  0x2a   : > { %v404_v9 = vld.sshfl [vmem:[#allocation1] sm:$0xff pattern:$0x75316420]  ;;  %v405_v10 = vld.sshfl [vmem:[#allocation1 + $0x8] sm:$0xff pattern:$0x75316420] }
  0x2b   : > { %659 = vmatpush.msk.msra.mxu2 %vm357_vm0, %v404_v9  ;;  %661 = vmatpush.msk.msra.mxu3 %vm357_vm0, %v405_v10 }
  0x2c   : > { %660 = vmatmul.msk.f32.vlgmr.msra.gmra.mxu2 %vm353_vm1, %v347_v8  ;;  %662 = vmatmul.msk.f32.vlgmr.msra.gmra.mxu3 %vm353_vm1, %v347_v8 }
  0x8a   : > { %v457_v11 = vpop.permute.xlu0 %456 }
  0x92   : > { %v467_v22 = vpop.permute.xlu0 %466 }
  0xa1   : > { %v379_v12 = vpop.f32.mrf.mxu0  ;;  %v399_v13 = vpop.f32.mrf.mxu1 }
  0xaf   : > { %v430_v14 = vpop.f32.mrf.mxu2  ;;  %v450_v15 = vpop.f32.mrf.mxu3 }
  0xb0   : > { %v431_v16 = vadd.f32 %v430_v14, %v379_v12  ;;  %v451_v17 = vadd.f32 %v450_v15, %v399_v13 }
  0xb2   : > { %v459_v18 = vadd.f32 %v457_v11, %v431_v16  ;;  %v460_v19 = vadd.f32 %v457_v11, %v451_v17 }
  0xb4   : > { %v461_v20 = vmax.f32 %v459_v18, 0.0  ;;  %v462_v21 = vmax.f32 %v460_v19, 0.0 }
  0xb6   : > { %v469_v23 = vmul.f32 %v467_v22, %v461_v20  ;;  %v470_v24 = vmul.f32 %v467_v22, %v462_v21 }
  0xb8   : > { %v471_v25 = vrot.slane %v469_v23, 4  ;;  %v477_v26 = vrot.slane %v470_v24, 4 }
  0xba   : > { %v472_v27 = vadd.f32 %v471_v25, %v469_v23  ;;  %v478_v28 = vadd.f32 %v477_v26, %v470_v24 }
  0xbc   : > { %v473_v29 = vrot.slane %v472_v27, 2  ;;  %v479_v30 = vrot.slane %v478_v28, 2 }
  0xbe   : > { %v474_v31 = vadd.f32 %v473_v29, %v472_v27  ;;  %v480_v32 = vadd.f32 %v479_v30, %v478_v28 }
  0xc0   : > { %v475_v33 = vrot.slane %v474_v31, 1  ;;  %v481_v34 = vrot.slane %v480_v32, 1 }
  0xc2   : > { %v476_v36 = vadd.f32 %v475_v33, %v474_v31  ;;  %v482_v37 = vadd.f32 %v481_v34, %v480_v32 }
  0xc4   : > { %v485_v38 = vadd.f32 %v484_v35, %v476_v36  ;;  %v486_v39 = vadd.f32 %v484_v35, %v482_v37 }
  0xc6   : > { %v663_v40 = vmul.f32 -1.442695, %v485_v38  ;;  %v664_v41 = vmul.f32 -1.442695, %v486_v39 }
  0xc8   : > { %730 = vpow2.f32 %v663_v40 }
  0xc9   : > { %732 = vpow2.f32 %v664_v41 }
  0xce   : > { %v731_v42 = vpop.eup %730 }
  0xcf   : > { %v733_v43 = vpop.eup %732  ;;  %v493_v44 = vadd.f32 1.0, %v731_v42 }
  0xd0   : > { %v494_v45 = vadd.f32 1.0, %v733_v43 }
  0xd1   : > { %734 = vrcp.f32 %v493_v44  ;;  %vm500_vm4 = vweird.f32 %v493_v44  ;;  %v506_v57 = vand.u32 2147483648, %v493_v44  ;;  %v504_v59 = vand.u32 2147483647, %v493_v44 }
  0xd2   : > { %736 = vrcp.f32 %v494_v45  ;;  %v521_v53 = vand.u32 2147483648, %v494_v45  ;;  %v519_v55 = vand.u32 2147483647, %v494_v45  ;;  %vm515_vm6 = vweird.f32 %v494_v45 }
  0xd3   : > { %v507_v0 = vor.u32 1.1754944e-38, %v506_v57  ;;  %vm505_vm9 = vcmp.eq.f32.partialorder %v504_v59, 8.507059e+37 }
  0xd4   : > { %v522_v61 = vor.u32 1.1754944e-38, %v521_v53  ;;  %vm520_vm8 = vcmp.eq.f32.partialorder %v519_v55, 8.507059e+37 }
  0xd7   : > { %v735_v46 = vpop.eup %734 }
  0xd8   : > { %v737_v47 = vpop.eup %736  ;;  %v496_v48 = vmul.f32 %v735_v46, %v493_v44  ;;  %vm501_vm2 = vweird.f32 %v735_v46 }
  0xd9   : > { %v511_v49 = vmul.f32 %v737_v47, %v494_v45  ;;  %vm516_vm3 = vweird.f32 %v737_v47  ;;  %vm950_vm5 = vmor %vm500_vm4, %vm501_vm2 }
  0xda   : > { %v497_v50 = vsub.f32 1.0, %v496_v48  ;;  %vm517_vm7 = vmor %vm515_vm6, %vm516_vm3 }
  0xdb   : > { %v512_v51 = vsub.f32 1.0, %v511_v49 }
  0xdc   : > { %v498_v52 = vmul.f32 %v735_v46, %v497_v50 }
  0xdd   : > { %v513_v54 = vmul.f32 %v737_v47, %v512_v51 }
  0xde   : > { %v499_v56 = vadd.f32 %v735_v46, %v498_v52 }
  0xdf   : > { %v514_v60 = vadd.f32 %v737_v47, %v513_v54 }
  0xe0   : > { %v503_v62 = vsel %vm950_vm5, %v735_v46, %v499_v56 }
  0xe1   : > { %v518_v63 = vsel %vm517_vm7, %v737_v47, %v514_v60  ;;  %v508_v4 = vsel %vm505_vm9, %v507_v0, %v503_v62 }
  0xe2   : > { %v523_v1 = vsel %vm520_vm8, %v522_v61, %v518_v63 }
  0xe3   : > { %v527_v3 = vrot.slane %v523_v1, 4 }
  0xe5   : > { %v528_v5 = vsel %vm357_vm0, %v508_v4, %v527_v3 }
  0xe6   : > { %v530_v6 = vmul.f32 %v528_v5, %v925_v2 }
  0xe8   : > { %531 = vst [vmem:[%s323_s29] sm:$0xff] %v530_v6 }
  0xe9   : > { %765 = shalt.err (!%p762_p5)
}
  0xea   : > { %673 = dma.vmem_to_hbm [thread:$0]  (%p902_p4), %s549_s25, 128, %s551_s6, %s533_s9  }
  0xeb PF: > { %p679_p6 = scmp.ge.s32.totalorder %s816_s8, 2  ;;  %s562_s19 = sand.u32 1, %s796_s26  }
  0xec   : > { %s563_s22 = scalar_lea.sflag [#allocation4], %s562_s19 }
  0xed   : > { %p676_p7 = pnand %p679_p6, %p909_p8 }
  0xef   : > { %p677_p9 = pneg %p676_p7 }
  0xf1   : > { %791 = dma.done.wait (%p677_p9), %s563_s22, 128  }
  0xf2   : > { %793 = vsyncadd (%p677_p9), %s563_s22, 4294967168  ;;  %s21_s8 = sadd.s32 1, %s816_s8   ;;  %s1008_s26 = smov %s800_s27 }
  0xf3   : > { %p18_p10 = scmp.ge.s32.totalorder %s21_s8, 4   ;;  %s1009_s27 = smov %s804_s28 }
  0xf4   : > { %s1010_s28 = smov %s915_s15  ;;  %s1011_s29 = smov %s812_s30 }
  0xf5   : > { %s1012_s30 = smov %s1014_s10  ;;  %20 = sbr.rel (!%p18_p10) target bundleno = 6 (0x6), region = 86 }
  0xfa   :  { %569 = vsyncpa [#allocation4], 1 }
  0xfb   :  { %571 = vsyncpa [#allocation4 + $0x1], 1 }

</bundles_post_ra>
